<compile_context>
chip_gen: v6e
topology: v6e:2x2x1
jax: 0.10.0
libtpu: 0.0.40
codegen_flags: <defaults>
</compile_context>

<pallas_src>
import jax
import jax.numpy as jnp
from jax.experimental import pallas as pl
from jax.experimental.pallas import tpu as pltpu  # noqa: F401


# ---------------------------------------------------------------------------
# Parameter packing: one (8, 128) f32 tile == one vreg == one DMA.
#   rows 0..3, cols 0:64  -> w1^T rows   (w1 is torch-style [out=64, in=4])
#   row  4,    cols 0:64  -> b1
#   row  5,    cols 0:64  -> w2[0, :]
#   row  6,    cols 0:64  -> w2[1, :]
#   row  7,    cols 0:2   -> b2
# ---------------------------------------------------------------------------
def pack_params(w1, b1, w2, b2):
    slab = jnp.zeros((8, 128), jnp.float32)
    slab = slab.at[0:4, 0:64].set(w1.T.astype(jnp.float32))
    slab = slab.at[4, 0:64].set(b1.astype(jnp.float32))
    slab = slab.at[5, 0:64].set(w2[0].astype(jnp.float32))
    slab = slab.at[6, 0:64].set(w2[1].astype(jnp.float32))
    slab = slab.at[7, 0:2].set(b2.astype(jnp.float32))
    return slab


def policy_kernel(x_ref, p_ref, o_ref):
    B = x_ref.shape[0]
    x = x_ref[...]            # [B, 4]   f32
    p = p_ref[...]            # [8, 128] packed parameter slab (single vreg)

    w1r = p[0:4, 0:64]        # [4, 64]  rows of w1^T
    b1 = p[4:5, 0:64]         # [1, 64]
    w2a = p[5:6, 0:64]        # [1, 64]  w2 row 0
    w2b = p[6:7, 0:64]        # [1, 64]  w2 row 1
    b2 = p[7:8, 0:2]          # [1, 2]

    # fc1 + ReLU: unrolled VPU broadcast-MAC over the 4 input features.
    h = (b1
         + x[:, 0:1] * w1r[0:1, :]
         + x[:, 1:2] * w1r[1:2, :]
         + x[:, 2:3] * w1r[2:3, :]
         + x[:, 3:4] * w1r[3:4, :])                 # [B, 64]
    h = jnp.maximum(h, 0.0)

    # fc2: only 2 output columns -> VPU multiply + lane reduction (no MXU).
    l0 = jnp.sum(h * w2a, axis=1, keepdims=True)    # [B, 1]
    l1 = jnp.sum(h * w2b, axis=1, keepdims=True)    # [B, 1]
    col = jax.lax.broadcasted_iota(jnp.int32, (B, 2), 1)
    logits = jnp.where(col == 0, l0, l1) + b2       # [B, 2]

    # softmax over dim=0 (batch axis) -- exact torch F.softmax(x, dim=0).
    m = jnp.max(logits, axis=0, keepdims=True)
    e = jnp.exp(logits - m)
    denom = jnp.sum(e, axis=0, keepdims=True)
    o_ref[...] = (e * pl.reciprocal(denom, approx=True)).astype(o_ref.dtype)


def policy_forward(x, param_slab):
    """x: [B, 4] f32 (whole batch in one block: softmax(dim=0) couples rows).
    param_slab: [8, 128] f32 built once with pack_params()."""
    B = x.shape[0]
    return pl.pallas_call(
        policy_kernel,
        out_shape=jax.ShapeDtypeStruct((B, 2), jnp.float32),
        in_specs=[
            pl.BlockSpec((B, 4), lambda: (0, 0)),
            pl.BlockSpec((8, 128), lambda: (0, 0)),
        ],
        out_specs=pl.BlockSpec((B, 2), lambda: (0, 0)),
    )(x, param_slab)


def policy_forward_ref(x, w1, b1, w2, b2):
    """Plain-JAX reference mirroring the PyTorch forward."""
    h = jax.nn.relu(x @ w1.T + b1)
    logits = h @ w2.T + b2
    return jax.nn.softmax(logits, axis=0)


def init_params(key):
    """Deterministic init mimicking nn.Linear's U(-1/sqrt(fan_in), +)."""
    k1, k2, k3, k4 = jax.random.split(key, 4)
    bound1 = 1.0 / jnp.sqrt(4.0)
    bound2 = 1.0 / jnp.sqrt(64.0)
    w1 = jax.random.uniform(k1, (64, 4), jnp.float32, -bound1, bound1)
    b1 = jax.random.uniform(k2, (64,), jnp.float32, -bound1, bound1)
    w2 = jax.random.uniform(k3, (2, 64), jnp.float32, -bound2, bound2)
    b2 = jax.random.uniform(k4, (2,), jnp.float32, -bound2, bound2)
    return w1, b1, w2, b2


if __name__ == "__main__":
    key = jax.random.PRNGKey(0)
    kx, kp = jax.random.split(key)

    # Small CartPole-style batch: each row is a 4-dim state.
    B = 2
    x = jax.random.normal(kx, (B, 4), jnp.float32)
    w1, b1, w2, b2 = init_params(kp)

    # Parameters are packed ONCE, outside the per-step forward path.
    slab = jax.block_until_ready(pack_params(w1, b1, w2, b2))

    out = jax.block_until_ready(policy_forward(x, slab))
    ref = policy_forward_ref(x, w1, b1, w2, b2)

    assert out.shape == (B, 2)
    # approx=True reciprocal (EUP vrcp) is ~2^-12..2^-14 relative accuracy.
    assert jnp.allclose(out, ref, atol=2e-3, rtol=2e-3), (out, ref)
    # softmax over dim=0: each column sums to 1 (up to approx-reciprocal error)
    assert jnp.allclose(jnp.sum(out, axis=0), jnp.ones((2,)), atol=2e-3)

    # Amortization path: many env states in one call (same kernel, one block).
    B2 = 64
    x2 = jax.random.normal(jax.random.PRNGKey(1), (B2, 4), jnp.float32)
    out2 = jax.block_until_ready(policy_forward(x2, slab))
    ref2 = policy_forward_ref(x2, w1, b1, w2, b2)
    assert jnp.allclose(out2, ref2, atol=2e-3, rtol=2e-3)

    print("KERNEL_OK")
</pallas_src>

<mosaic_0001>
module attributes {stable_mosaic.version = 11 : i64} {
  func.func @policy_kernel(%arg0: memref<2x4xf32, #tpu.memory_space<vmem>>, %arg1: memref<8x128xf32, #tpu.memory_space<vmem>>, %arg2: memref<2x2xf32, #tpu.memory_space<vmem>>) attributes {dimension_semantics = [], scalar_prefetch = 0 : i64, scratch_operands = 0 : i64, tpu.core_type = #tpu.core_type<tc>} {
    %c0 = arith.constant 0 : index
    %c0_0 = arith.constant 0 : index
    %0 = vector.load %arg0[%c0, %c0_0] : memref<2x4xf32, #tpu.memory_space<vmem>>, vector<2x4xf32>
    %c0_1 = arith.constant 0 : index
    %c0_2 = arith.constant 0 : index
    %1 = vector.load %arg1[%c0_1, %c0_2] : memref<8x128xf32, #tpu.memory_space<vmem>>, vector<8x128xf32>
    %2 = vector.extract_strided_slice %1 {offsets = [0, 0], sizes = [4, 64], strides = [1, 1]} : vector<8x128xf32> to vector<4x64xf32>
    %3 = vector.extract_strided_slice %1 {offsets = [4, 0], sizes = [1, 64], strides = [1, 1]} : vector<8x128xf32> to vector<1x64xf32>
    %4 = vector.extract_strided_slice %1 {offsets = [5, 0], sizes = [1, 64], strides = [1, 1]} : vector<8x128xf32> to vector<1x64xf32>
    %5 = vector.extract_strided_slice %1 {offsets = [6, 0], sizes = [1, 64], strides = [1, 1]} : vector<8x128xf32> to vector<1x64xf32>
    %6 = vector.extract_strided_slice %1 {offsets = [7, 0], sizes = [1, 2], strides = [1, 1]} : vector<8x128xf32> to vector<1x2xf32>
    %7 = vector.extract_strided_slice %0 {offsets = [0, 0], sizes = [2, 1], strides = [1, 1]} : vector<2x4xf32> to vector<2x1xf32>
    %8 = vector.extract_strided_slice %2 {offsets = [0, 0], sizes = [1, 64], strides = [1, 1]} : vector<4x64xf32> to vector<1x64xf32>
    %9 = vector.broadcast %7 : vector<2x1xf32> to vector<2x64xf32>
    %10 = vector.broadcast %8 : vector<1x64xf32> to vector<2x64xf32>
    %11 = arith.mulf %9, %10 : vector<2x64xf32>
    %12 = vector.broadcast %3 : vector<1x64xf32> to vector<2x64xf32>
    %13 = arith.addf %12, %11 : vector<2x64xf32>
    %14 = vector.extract_strided_slice %0 {offsets = [0, 1], sizes = [2, 1], strides = [1, 1]} : vector<2x4xf32> to vector<2x1xf32>
    %15 = vector.extract_strided_slice %2 {offsets = [1, 0], sizes = [1, 64], strides = [1, 1]} : vector<4x64xf32> to vector<1x64xf32>
    %16 = vector.broadcast %14 : vector<2x1xf32> to vector<2x64xf32>
    %17 = vector.broadcast %15 : vector<1x64xf32> to vector<2x64xf32>
    %18 = arith.mulf %16, %17 : vector<2x64xf32>
    %19 = arith.addf %13, %18 : vector<2x64xf32>
    %20 = vector.extract_strided_slice %0 {offsets = [0, 2], sizes = [2, 1], strides = [1, 1]} : vector<2x4xf32> to vector<2x1xf32>
    %21 = vector.extract_strided_slice %2 {offsets = [2, 0], sizes = [1, 64], strides = [1, 1]} : vector<4x64xf32> to vector<1x64xf32>
    %22 = vector.broadcast %20 : vector<2x1xf32> to vector<2x64xf32>
    %23 = vector.broadcast %21 : vector<1x64xf32> to vector<2x64xf32>
    %24 = arith.mulf %22, %23 : vector<2x64xf32>
    %25 = arith.addf %19, %24 : vector<2x64xf32>
    %26 = vector.extract_strided_slice %0 {offsets = [0, 3], sizes = [2, 1], strides = [1, 1]} : vector<2x4xf32> to vector<2x1xf32>
    %27 = vector.extract_strided_slice %2 {offsets = [3, 0], sizes = [1, 64], strides = [1, 1]} : vector<4x64xf32> to vector<1x64xf32>
    %28 = vector.broadcast %26 : vector<2x1xf32> to vector<2x64xf32>
    %29 = vector.broadcast %27 : vector<1x64xf32> to vector<2x64xf32>
    %30 = arith.mulf %28, %29 : vector<2x64xf32>
    %31 = arith.addf %25, %30 : vector<2x64xf32>
    %cst = arith.constant 0.000000e+00 : f32
    %32 = vector.broadcast %cst : f32 to vector<2x64xf32>
    %33 = arith.maximumf %31, %32 : vector<2x64xf32>
    %34 = vector.broadcast %4 : vector<1x64xf32> to vector<2x64xf32>
    %35 = arith.mulf %33, %34 : vector<2x64xf32>
    %cst_3 = arith.constant dense<0.000000e+00> : vector<2xf32>
    %36 = vector.multi_reduction <add>, %35, %cst_3 [1] : vector<2x64xf32> to vector<2xf32>
    %37 = vector.shape_cast %36 : vector<2xf32> to vector<2x1xf32>
    %38 = vector.broadcast %5 : vector<1x64xf32> to vector<2x64xf32>
    %39 = arith.mulf %33, %38 : vector<2x64xf32>
    %cst_4 = arith.constant dense<0.000000e+00> : vector<2xf32>
    %40 = vector.multi_reduction <add>, %39, %cst_4 [1] : vector<2x64xf32> to vector<2xf32>
    %41 = vector.shape_cast %40 : vector<2xf32> to vector<2x1xf32>
    %42 = tpu.iota {dimensions = array<i32: 1>} : vector<2x2xi32>
    %c0_i32 = arith.constant 0 : i32
    %43 = vector.broadcast %c0_i32 : i32 to vector<2x2xi32>
    %44 = arith.cmpi eq, %42, %43 : vector<2x2xi32>
    %45 = vector.shape_cast %37 : vector<2x1xf32> to vector<2x1xf32>
    %46 = vector.broadcast %45 : vector<2x1xf32> to vector<2x2xf32>
    %47 = vector.shape_cast %41 : vector<2x1xf32> to vector<2x1xf32>
    %48 = vector.broadcast %47 : vector<2x1xf32> to vector<2x2xf32>
    %49 = arith.select %44, %46, %48 : vector<2x2xi1>, vector<2x2xf32>
    %50 = vector.broadcast %6 : vector<1x2xf32> to vector<2x2xf32>
    %51 = arith.addf %49, %50 : vector<2x2xf32>
    %cst_5 = arith.constant dense<0xFF800000> : vector<2xf32>
    %52 = vector.multi_reduction <maximumf>, %51, %cst_5 [0] : vector<2x2xf32> to vector<2xf32>
    %53 = vector.shape_cast %52 : vector<2xf32> to vector<1x2xf32>
    %54 = vector.broadcast %53 : vector<1x2xf32> to vector<2x2xf32>
    %55 = arith.subf %51, %54 : vector<2x2xf32>
    %56 = math.exp %55 : vector<2x2xf32>
    %cst_6 = arith.constant dense<0.000000e+00> : vector<2xf32>
    %57 = vector.multi_reduction <add>, %56, %cst_6 [0] : vector<2x2xf32> to vector<2xf32>
    %58 = vector.shape_cast %57 : vector<2xf32> to vector<1x2xf32>
    %59 = tpu.reciprocal %58 {approx = true} : vector<1x2xf32> -> vector<1x2xf32>
    %60 = vector.broadcast %59 : vector<1x2xf32> to vector<2x2xf32>
    %61 = arith.mulf %56, %60 : vector<2x2xf32>
    %c0_7 = arith.constant 0 : index
    %c0_8 = arith.constant 0 : index
    %62 = vector.load %arg2[%c0_7, %c0_8] : memref<2x2xf32, #tpu.memory_space<vmem>>, vector<2x2xf32>
    tpu.vector_store %arg2[%c0_7, %c0_8], %61 {strides = array<i32>} : memref<2x2xf32, #tpu.memory_space<vmem>>, vector<2x2xf32>,
    return
  }
}

</mosaic_0001>

<bundles_post_ra>
// kernel: tpu_custom_call.1
= control target key start
LH: loop header
LB: loop body
LE: loop exit
PB: predicated region body
PF: predicated region fallthrough
CT: control target
= control target key end

     0   :  { %7 = vsyncpa [#allocation3], 0  ;;  %s263_s0 = inlined_call_operand.hbm [shape: f32[2,4], index: 0, kind: input, shape index: {}]   ;;  %s264_s1 = inlined_call_operand.hbm [shape: f32[8,128], index: 1, kind: input, shape index: {}]   ;;  %s265_s2 = inlined_call_operand.hbm [shape: f32[2,2], index: 2, kind: output, shape index: {}]  }
   0x1   :  { %8 = vsyncpa [#allocation6], 0 }
   0x2   :  { %9 = vsyncpa [#allocation4], 0  ;;  %s229_s9 = smov [#allocation2]   ;;  %s230_s11 = smov [#allocation5]  }
   0x3   :  { %s16_s10 = sshll.u32 %s229_s9, 4  ;;  %s26_s12 = sshll.u32 %s230_s11, 4  ;;  %s17_s10 = int_to_ptr.vmem [resolvable:$true] %s16_s10  ;;  %s27_s12 = int_to_ptr.vmem [resolvable:$true] %s26_s12 }
   0x4   :  { %s171_s13 = scalar_lea.vmem %s17_s10, 32  ;;  %p176_p1 = scmp.lt.s32.totalorder %s17_s10, %s17_s10 }
   0x5   :  { %p172_p0 = scmp.ne.s32.totalorder %s17_s10, %s171_s13  ;;  %p177_p2 = scmp.lt.s32.totalorder %s171_s13, %s171_s13 }
   0x7   :  { %p178_p3 = por %p177_p2, %p176_p1 }
   0x9   :  { %p179_p4 = pnand %p178_p3, %p172_p0 }
   0xb   :  { %182 = shalt.err (!%p179_p4)
}
   0xc   :  { %19 = dma.hbm_to_vmem [thread:$0]  %s263_s0, 32, %s17_s10, [#allocation3]  }
   0xd   :  { %s191_s16 = scalar_lea.vmem %s27_s12, 128  ;;  %p196_p6 = scmp.lt.s32.totalorder %s27_s12, %s27_s12 }
   0xe   :  { %p192_p5 = scmp.ne.s32.totalorder %s27_s12, %s191_s16  ;;  %p197_p7 = scmp.lt.s32.totalorder %s191_s16, %s191_s16 }
  0x10   :  { %p198_p8 = por %p197_p7, %p196_p6 }
  0x12   :  { %p199_p9 = pnand %p198_p8, %p192_p5 }
  0x14   :  { %202 = shalt.err (!%p199_p9)
}
  0x15   :  { %29 = dma.hbm_to_vmem [thread:$0]  %s264_s1, 128, %s27_s12, [#allocation6]  }
  0x16   :  { %223 = dma.done.wait [#allocation3], 32  }
  0x17   :  { %224 = vsyncadd [#allocation3], 4294967264 }
  0x18   :  { %225 = dma.done.wait [#allocation6], 128  }
  0x19   :  { %226 = vsyncadd [#allocation6], 4294967168  ;;  %v231_v0 = vmov 0   ;;  %v232_v1 = vmov 2   ;;  %v36_v2 = vld [vmem:[#allocation2] sm:$0x3]  ;;  %v43_v5 = vlaneseq }
  0x1a   :  { %154 = vset.pattern.permute.xlu0 %v231_v0  ;;  %156 = vset.pattern.permute.xlu1 %v232_v1  ;;  %v233_v3 = vmov 1   ;;  %v234_v4 = vmov 3   ;;  %v37_v8 = vld [vmem:[#allocation5] sm:$0xff]  ;;  %vm89_vm0 = vcmask 517120   ;;  %vm110_vm2 = vcmask 9216   ;;  %s235_s0 = smov [#allocation7]  }
  0x1b   :  { %40 = vperm.xlu0 %154, %v36_v2   ;;  %64 = vperm.xlu1 %156, %v36_v2   ;;  %v44_v6 = vshrl.u32 %v43_v5, 7  ;;  %v102_v39 = vand.u32 127, %v43_v5  ;;  %s137_s1 = sshll.u32 %s235_s0, 4  ;;  %s138_s1 = int_to_ptr.vmem [resolvable:$true] %s137_s1 }
  0x1c   :  { %s203_s19 = scalar_lea.vmem %s138_s1, 32  ;;  %p208_p11 = scmp.lt.s32.totalorder %s138_s1, %s138_s1 }
  0x1d   :  { %v45_v7 = vsub.s32 0, %v44_v6  ;;  %v50_v10 = vsub.s32 4, %v44_v6  ;;  %v59_v11 = vsub.s32 1, %v44_v6  ;;  %v69_v13 = vsub.s32 2, %v44_v6  ;;  %p204_p10 = scmp.ne.s32.totalorder %s138_s1, %s203_s19  ;;  %p209_p12 = scmp.lt.s32.totalorder %s203_s19, %s203_s19 }
  0x1e   :  { %v79_v15 = vsub.s32 3, %v44_v6  ;;  %v95_v25 = vsub.s32 6, %v44_v6  ;;  %v86_v29 = vsub.s32 5, %v44_v6  ;;  %v107_v40 = vsub.s32 7, %v44_v6 }
  0x1f   :  { %155 = vset.pattern.permute.xlu0 %v233_v3  ;;  %157 = vset.pattern.permute.xlu1 %v234_v4  ;;  %v46_v9 = vrot.slane %v37_v8, %v45_v7  ;;  %v51_v16 = vrot.slane %v37_v8, %v50_v10  ;;  %v60_v18 = vrot.slane %v37_v8, %v59_v11  ;;  %vm103_vm1 = vcmp.eq.s32.totalorder %v102_v39, 0  ;;  %p210_p13 = por %p209_p12, %p208_p11 }
  0x20   :  { %54 = vperm.xlu0 %155, %v36_v2   ;;  %74 = vperm.xlu1 %157, %v36_v2   ;;  %v70_v19 = vrot.slane %v37_v8, %v69_v13  ;;  %v80_v20 = vrot.slane %v37_v8, %v79_v15  ;;  %v96_v32 = vrot.slane %v37_v8, %v95_v25 }
  0x21   :  { %v87_v33 = vrot.slane %v37_v8, %v86_v29  ;;  %v108_v41 = vrot.slane %v37_v8, %v107_v40  ;;  %p211_p0 = pnand %p210_p13, %p204_p10 }
  0x24   :  { %158 = vset.pattern.permute.xlu0 %v234_v4 }
  0x96   :  { %v41_v12 = vpop.permute.xlu0 %40  ;;  %v65_v14 = vpop.permute.xlu1 %64 }
  0x97   :  { %v47_v17 = vmul.f32 %v46_v9, %v41_v12  ;;  %v71_v26 = vmul.f32 %v70_v19, %v65_v14 }
  0x99   :  { %v52_v23 = vadd.f32 %v51_v16, %v47_v17 }
  0x9b   :  { %v55_v21 = vpop.permute.xlu0 %54  ;;  %v75_v22 = vpop.permute.xlu1 %74 }
  0x9c   :  { %v61_v24 = vmul.f32 %v60_v18, %v55_v21  ;;  %v81_v28 = vmul.f32 %v80_v20, %v75_v22 }
  0x9e   :  { %v62_v27 = vadd.f32 %v61_v24, %v52_v23 }
  0xa0   :  { %v72_v30 = vadd.f32 %v71_v26, %v62_v27 }
  0xa2   :  { %v82_v31 = vadd.f32 %v81_v28, %v72_v30 }
  0xa4   :  { %v83_v34 = vmax.f32 %v82_v31, 0.0 }
  0xa6   :  { %v97_v35 = vmul.f32 %v96_v32, %v83_v34  ;;  %v88_v36 = vmul.f32 %v87_v33, %v83_v34 }
  0xa8   :  { %v98_v37 = vsel %vm89_vm0, %v97_v35, 0.0  ;;  %v90_v38 = vsel %vm89_vm0, %v88_v36, 0.0 }
  0xa9   :  { %99 = vadd.xlane.f32.xlu0 %v98_v37  ;;  %91 = vadd.xlane.f32.xlu1 %v90_v38 }
 0x132   :  { %v100_v42 = vpop.xlane.xlu0 %99  ;;  %v92_v43 = vpop.xlane.xlu1 %91 }
 0x133   :  { %v104_v44 = vsel %vm103_vm1, %v92_v43, %v100_v42 }
 0x134   :  { %v109_v45 = vadd.f32 %v108_v41, %v104_v44 }
 0x136   :  { %v111_v46 = vsel %vm110_vm2, %v109_v45, -inf }
 0x137   :  { %v112_v47 = vrot.slane %v111_v46, 4 }
 0x139   :  { %v113_v48 = vmax.f32 %v111_v46, %v112_v47 }
 0x13b   :  { %v114_v49 = vrot.slane %v113_v48, 2 }
 0x13d   :  { %v115_v50 = vmax.f32 %v113_v48, %v114_v49 }
 0x13f   :  { %v116_v51 = vrot.slane %v115_v50, 1 }
 0x141   :  { %v117_v52 = vmax.f32 %v115_v50, %v116_v51 }
 0x143   :  { %v118_v53 = vsub.f32 %v109_v45, %v117_v52 }
 0x145   :  { %v119_v54 = vmul.f32 1.442695, %v118_v53 }
 0x147   :  { %159 = vpow2.f32 %v119_v54 }
 0x154   :  { %v160_v55 = vpop.eup %159 }
 0x155   :  { %v121_v56 = vsel %vm110_vm2, %v160_v55, 0.0 }
 0x156   :  { %v122_v57 = vrot.slane %v121_v56, 4 }
 0x158   :  { %v123_v58 = vadd.f32 %v122_v57, %v121_v56 }
 0x15a   :  { %v124_v59 = vrot.slane %v123_v58, 2 }
 0x15c   :  { %v125_v60 = vadd.f32 %v124_v59, %v123_v58 }
 0x15e   :  { %v126_v61 = vrot.slane %v125_v60, 1 }
 0x160   :  { %v127_v62 = vadd.f32 %v126_v61, %v125_v60 }
 0x162   :  { %161 = vrcp.f32 %v127_v62 }
 0x16f   :  { %v162_v63 = vpop.eup %161 }
 0x170   :  { %v129_v0 = vmul.f32 %v162_v63, %v160_v55 }
 0x172   :  { %130 = vst.msk [vmem:[#allocation7] sm:$0x3] %vm110_vm2, %v129_v0 }
 0x173   :  { %214 = shalt.err (!%p211_p0)
}
 0x174   :  { %140 = dma.vmem_to_hbm [thread:$0]  %s138_s1, 32, %s265_s2, [#allocation4]  }
 0x175   :  { %227 = dma.done.wait [#allocation4], 32  }
 0x176   :  { %228 = vsyncadd [#allocation4], 4294967264 }
 0x177   :  { %144 = vsyncpa [#allocation3], 1 }
 0x178   :  { %145 = vsyncpa [#allocation6], 1 }
 0x179   :  { %146 = vsyncpa [#allocation4], 1 }

</bundles_post_ra>
